<compile_context>
chip_gen: v6e
topology: v6e:2x2x1
jax: 0.10.0
libtpu: 0.0.40
codegen_flags: <defaults>
</compile_context>

<pallas_src>
import jax
import jax.numpy as jnp
from jax.experimental import pallas as pl
from jax.experimental.pallas import tpu as pltpu


def _round_up(x, m):
    return ((x + m - 1) // m) * m


def _largest_divisor_leq(n, cap):
    cap = max(1, min(n, cap))
    for d in range(cap, 0, -1):
        if n % d == 0:
            return d
    return 1


def _make_kernel(num_layers, n_blk):
    """Fused kernel: transpose tile -> L x (MXU matmul + bias + relu) -> +residual."""

    def kernel(x_ref, w_ref, b_ref, o_ref):
        # x_ref: (n_blk, t_blk, C)      activation tile(s)
        # w_ref: (L, hidden, C)         BN-folded conv weights (compute dtype)
        # b_ref: (L, hidden, 1)         BN-folded biases (f32)
        # o_ref: (n_blk, hidden, t_blk) lane-dense output tile(s)
        for b in range(n_blk):          # short unrolled loop; n_blk == 1 for big T
            xt = x_ref[b].T             # (C, t_blk): one XLU transpose
            out = xt                    # residual == raw pre-BN input == xt
            for i in range(num_layers):
                # conv1x1 + BN folded: MXU matmul with f32 accumulation.
                y = jnp.dot(w_ref[i], out, preferred_element_type=jnp.float32)
                y = jnp.maximum(y + b_ref[i], 0.0)      # bias + ReLU (dropout = id)
                out = y if i + 1 == num_layers else y.astype(xt.dtype)
            # Residual stays in the input dtype; upcast happens in this add.
            o_ref[b] = (out + xt).astype(o_ref.dtype)

    return kernel


def fold_embedding_params(conv_weights, bn_scales, bn_shifts,
                          *, compute_dtype=jnp.float32):
    """Fold eval-mode BN affines into the 1x1 conv weights + a bias (do ONCE).

      layer 0 :  W0' = diag(s1) @ W0 @ diag(s0) ,  b0' = s1 * (W0 @ h0) + h1
      layer i :  Wi' = diag(s_{i+1}) @ Wi       ,  bi' = h_{i+1}
    """
    ws, bs = [], []
    for i, w in enumerate(conv_weights):
        w = jnp.asarray(w, jnp.float32)                       # (hidden, c_in)
        s_out = jnp.asarray(bn_scales[i + 1], jnp.float32)
        h_out = jnp.asarray(bn_shifts[i + 1], jnp.float32)
        if i == 0:
            s_in = jnp.asarray(bn_scales[0], jnp.float32)
            h_in = jnp.asarray(bn_shifts[0], jnp.float32)
            ws.append(s_out[:, None] * w * s_in[None, :])
            bs.append(s_out * (w @ h_in) + h_out)
        else:
            ws.append(s_out[:, None] * w)
            bs.append(h_out)
    w_stack = jnp.stack(ws).astype(compute_dtype)             # (L, hidden, C)
    b_stack = jnp.stack(bs)[:, :, None].astype(jnp.float32)   # (L, hidden, 1)
    return w_stack, b_stack


def embedding_layers_forward(x_ntf, w_stack, b_stack, *, tile_t=None):
    """EmbeddingLayers forward (eval mode), using pre-folded BN/conv params.

    Args:
      x_ntf:   (N, T, freq_bins) input.  bf16 halves HBM traffic and VMEM;
               accumulation / elementwise math stay f32 inside the kernel.
      w_stack: (L, hidden, C) BN-folded weights from fold_embedding_params
               (already in the desired MXU operand dtype).
      b_stack: (L, hidden, 1) f32 BN-folded biases.
      tile_t:  optional time-steps per block (rounded to a multiple of 128).

    Returns:
      (N, hidden, T, 1) output in x_ntf.dtype (PyTorch NCHW layout).
    """
    N, T, F = x_ntf.shape
    L, hidden, C = w_stack.shape
    assert L >= 1
    assert C == F, "stacked weights require freq_bins == hidden_units"
    assert F == hidden, "residual add in the module requires freq_bins == hidden_units"

    dt = x_ntf.dtype
    itemsize = x_ntf.dtype.itemsize

    # ---- tiling policy (dtype-aware; budget incl. 4x lane-pad of the input) --
    if tile_t is None:
        tile_t = 8192 if dt == jnp.bfloat16 else 4096

    if T >= 128:
        n_blk = 1
        tile_t = max(128, (tile_t // 128) * 128)
        tile_t = min(tile_t, _round_up(T, 128))       # never bigger than needed
        if N == 1 and T >= 256:
            # Split T into >= 2 tiles so both v7x TensorCores get work.
            tile_t = min(tile_t, _round_up((T + 1) // 2, 128))
    else:
        # Small-T regime: whole T per block, several batch rows per grid step
        # so each step still moves a large DMA.
        tile_t = T
        n_target = max(1, 4096 // max(T, 1))
        cap = n_target if N == 1 else min(n_target, max(1, (N + 1) // 2))
        n_blk = _largest_divisor_leq(N, cap)

    grid = (pl.cdiv(N, n_blk), pl.cdiv(T, tile_t))

    flops = 2 * N * T * hidden * (F + (L - 1) * hidden)
    bytes_accessed = (N * T * F * itemsize                 # input read
                      + N * hidden * T * itemsize          # output write
                      + w_stack.size * w_stack.dtype.itemsize
                      + b_stack.size * 4)

    out_nht = pl.pallas_call(
        _make_kernel(L, n_blk),
        out_shape=jax.ShapeDtypeStruct((N, hidden, T), dt),
        grid_spec=pltpu.PrefetchScalarGridSpec(
            num_scalar_prefetch=0,
            grid=grid,
            in_specs=[
                pl.BlockSpec((n_blk, tile_t, F), lambda n, t: (n, t, 0)),
                pl.BlockSpec((L, hidden, F), lambda n, t: (0, 0, 0)),
                pl.BlockSpec((L, hidden, 1), lambda n, t: (0, 0, 0)),
            ],
            out_specs=pl.BlockSpec((n_blk, hidden, tile_t),
                                   lambda n, t: (n, 0, t)),
        ),
        # Both axes independent -> shards across v7x's 2 TensorCores.  Default
        # scoped VMEM is ample at the chosen tile sizes (see budget at top),
        # so no vmem_limit_bytes override.
        compiler_params=pltpu.CompilerParams(
            dimension_semantics=("parallel", "parallel")),
        cost_estimate=pl.CostEstimate(flops=flops, transcendentals=0,
                                      bytes_accessed=bytes_accessed),
    )(x_ntf, w_stack, b_stack)

    # Already channels-major (N, hidden, T): just add the trailing W=1 axis.
    return out_nht[:, :, :, None]


def _reference_forward(x_ntf, conv_weights, bn_scales, bn_shifts):
    """Pure-JAX reference mirroring the PyTorch forward (eval mode, unfolded BN)."""
    N, T, F = x_ntf.shape
    x = x_ntf.reshape(N * T, F).astype(jnp.float32)
    residual = x
    out = x * bn_scales[0][None, :] + bn_shifts[0][None, :]
    for i, w in enumerate(conv_weights):
        y = out @ jnp.asarray(w, jnp.float32).T
        y = y * bn_scales[i + 1][None, :] + bn_shifts[i + 1][None, :]
        out = jnp.maximum(y, 0.0)   # dropout identity in eval
    out = out + residual
    hidden = conv_weights[-1].shape[0]
    return out.reshape(N, T, hidden).transpose(0, 2, 1)[:, :, :, None]


def _bn_affine(gamma, beta, running_mean, running_var, eps=1e-5):
    scale = gamma / jnp.sqrt(running_var + eps)
    shift = beta - running_mean * scale
    return scale, shift


if __name__ == "__main__":
    # Small configuration consistent with the module.
    # Residual add requires freq_bins == hidden_units.
    freq_bins = 32
    hidden_units = 32
    emb_layers = 2
    drop_rate = 0.1          # unused: eval-mode dropout is identity
    N, T = 2, 256

    key = jax.random.PRNGKey(0)
    keys = jax.random.split(key, 1 + emb_layers + 3 * (emb_layers + 1))
    ki = iter(keys)

    x = jax.random.normal(next(ki), (N, T, freq_bins), dtype=jnp.float32)

    # Deterministic synthetic parameters (shapes from __init__).
    conv_weights = []
    for i in range(emb_layers):
        in_ch = freq_bins if i == 0 else hidden_units
        w = jax.random.normal(next(ki), (hidden_units, in_ch),
                              dtype=jnp.float32) * 0.1
        conv_weights.append(w)   # (out_ch, in_ch), 1x1 spatial dims squeezed

    bn_scales, bn_shifts = [], []
    bn_channels = [freq_bins] + [hidden_units] * emb_layers
    for c_idx, c in enumerate(bn_channels):
        gamma = 1.0 + 0.1 * jax.random.normal(next(ki), (c,), dtype=jnp.float32)
        beta = 0.1 * jax.random.normal(next(ki), (c,), dtype=jnp.float32)
        running_mean = 0.1 * jax.random.normal(next(ki), (c,), dtype=jnp.float32)
        running_var = jnp.abs(
            1.0 + 0.1 * jax.random.normal(jax.random.PRNGKey(100 + c_idx), (c,),
                                          dtype=jnp.float32))
        s, b = _bn_affine(gamma, beta, running_mean, running_var)
        bn_scales.append(s)
        bn_shifts.append(b)

    # TODO(synk): dropout with training=True (stateful RNG masking) and
    # training-mode BN statistics are not reproduced; eval-mode semantics only.

    # BN fold is done ONCE (not per forward call).
    w_f32, b_f32 = fold_embedding_params(conv_weights, bn_scales, bn_shifts,
                                         compute_dtype=jnp.float32)
    w_bf16, b_bf16 = fold_embedding_params(conv_weights, bn_scales, bn_shifts,
                                           compute_dtype=jnp.bfloat16)

    # --- f32 path: matches the PyTorch eval forward up to fp reassociation ---
    out = jax.block_until_ready(embedding_layers_forward(x, w_f32, b_f32))
    ref = _reference_forward(x, conv_weights, bn_scales, bn_shifts)
    assert out.shape == (N, hidden_units, T, 1), out.shape
    assert jnp.allclose(out, ref, atol=1e-4, rtol=1e-4), \
        float(jnp.max(jnp.abs(out - ref)))

    # --- bf16-fed MXU path (half HBM traffic); accumulation stays f32 ---
    out_bf = jax.block_until_ready(
        embedding_layers_forward(x.astype(jnp.bfloat16), w_bf16, b_bf16))
    assert out_bf.shape == (N, hidden_units, T, 1), out_bf.shape
    assert jnp.allclose(out_bf.astype(jnp.float32), ref,
                        atol=1.5e-1, rtol=1e-1), \
        float(jnp.max(jnp.abs(out_bf.astype(jnp.float32) - ref)))

    # --- ragged T (no pad/slice; partial last block handled by Pallas) ---
    T2 = 200
    x2 = jax.random.normal(jax.random.PRNGKey(1), (N, T2, freq_bins),
                           dtype=jnp.float32)
    out2 = jax.block_until_ready(embedding_layers_forward(x2, w_f32, b_f32))
    ref2 = _reference_forward(x2, conv_weights, bn_scales, bn_shifts)
    assert out2.shape == (N, hidden_units, T2, 1), out2.shape
    assert jnp.allclose(out2, ref2, atol=1e-4, rtol=1e-4), \
        float(jnp.max(jnp.abs(out2 - ref2)))

    # --- small-T / larger-N regime (several batch rows per grid step) ---
    N3, T3 = 4, 64
    x3 = jax.random.normal(jax.random.PRNGKey(2), (N3, T3, freq_bins),
                           dtype=jnp.float32)
    out3 = jax.block_until_ready(embedding_layers_forward(x3, w_f32, b_f32))
    ref3 = _reference_forward(x3, conv_weights, bn_scales, bn_shifts)
    assert out3.shape == (N3, hidden_units, T3, 1), out3.shape
    assert jnp.allclose(out3, ref3, atol=1e-4, rtol=1e-4), \
        float(jnp.max(jnp.abs(out3 - ref3)))

    print("KERNEL_OK")
</pallas_src>

<mosaic_0001>
module attributes {stable_mosaic.version = 11 : i64} {
  func.func @kernel(%arg0: i32, %arg1: i32, %arg2: memref<1x256x32xf32, #tpu.memory_space<vmem>>, %arg3: memref<2x32x32xf32, #tpu.memory_space<vmem>>, %arg4: memref<2x32x1xf32, #tpu.memory_space<vmem>>, %arg5: memref<1x32x256xf32, #tpu.memory_space<vmem>>) attributes {dimension_semantics = [#tpu.dimension_semantics<parallel>, #tpu.dimension_semantics<parallel>], iteration_bounds = array<i64: 2, 1>, scalar_prefetch = 0 : i64, scratch_operands = 0 : i64, tpu.core_type = #tpu.core_type<tc>, window_params = [{transform_indices = @transform_0, window_bounds = array<i64: 1, 256, 32>}, {pipeline_mode = #tpu.pipeline_mode<synchronous>, transform_indices = @transform_1, window_bounds = array<i64: 2, 32, 32>}, {pipeline_mode = #tpu.pipeline_mode<synchronous>, transform_indices = @transform_2, window_bounds = array<i64: 2, 32, 1>}, {transform_indices = @transform_3, window_bounds = array<i64: 1, 32, 256>}]} {
    %c0 = arith.constant 0 : index
    %c0_0 = arith.constant 0 : index
    %c0_1 = arith.constant 0 : index
    %0 = vector.load %arg2[%c0, %c0_0, %c0_1] : memref<1x256x32xf32, #tpu.memory_space<vmem>>, vector<1x256x32xf32>
    %1 = vector.shape_cast %0 : vector<1x256x32xf32> to vector<256x32xf32>
    %2 = tpu.transpose %1, [1, 0] : vector<256x32xf32> -> vector<32x256xf32>
    %c0_2 = arith.constant 0 : index
    %c0_3 = arith.constant 0 : index
    %c0_4 = arith.constant 0 : index
    %3 = vector.load %arg3[%c0_2, %c0_3, %c0_4] : memref<2x32x32xf32, #tpu.memory_space<vmem>>, vector<1x32x32xf32>
    %4 = vector.shape_cast %3 : vector<1x32x32xf32> to vector<32x32xf32>
    %cst = arith.constant dense<0.000000e+00> : vector<32x256xf32>
    %5 = tpu.matmul %4, %2, %cst {dimension_numbers = #tpu.dot_dimension_numbers<[1], [0], [0], [1], [0, 0, 1, 1], [], []>} : vector<32x32xf32>, vector<32x256xf32>, vector<32x256xf32> -> vector<32x256xf32>
    %c0_5 = arith.constant 0 : index
    %c0_6 = arith.constant 0 : index
    %c0_7 = arith.constant 0 : index
    %6 = vector.load %arg4[%c0_5, %c0_6, %c0_7] : memref<2x32x1xf32, #tpu.memory_space<vmem>>, vector<1x32x1xf32>
    %7 = vector.shape_cast %6 : vector<1x32x1xf32> to vector<32x1xf32>
    %8 = vector.broadcast %7 : vector<32x1xf32> to vector<32x256xf32>
    %9 = arith.addf %5, %8 : vector<32x256xf32>
    %cst_8 = arith.constant 0.000000e+00 : f32
    %10 = vector.broadcast %cst_8 : f32 to vector<32x256xf32>
    %11 = arith.maximumf %9, %10 : vector<32x256xf32>
    %c1 = arith.constant 1 : index
    %c0_9 = arith.constant 0 : index
    %c0_10 = arith.constant 0 : index
    %12 = vector.load %arg3[%c1, %c0_9, %c0_10] : memref<2x32x32xf32, #tpu.memory_space<vmem>>, vector<1x32x32xf32>
    %13 = vector.shape_cast %12 : vector<1x32x32xf32> to vector<32x32xf32>
    %cst_11 = arith.constant dense<0.000000e+00> : vector<32x256xf32>
    %14 = tpu.matmul %13, %11, %cst_11 {dimension_numbers = #tpu.dot_dimension_numbers<[1], [0], [0], [1], [0, 0, 1, 1], [], []>} : vector<32x32xf32>, vector<32x256xf32>, vector<32x256xf32> -> vector<32x256xf32>
    %c1_12 = arith.constant 1 : index
    %c0_13 = arith.constant 0 : index
    %c0_14 = arith.constant 0 : index
    %15 = vector.load %arg4[%c1_12, %c0_13, %c0_14] : memref<2x32x1xf32, #tpu.memory_space<vmem>>, vector<1x32x1xf32>
    %16 = vector.shape_cast %15 : vector<1x32x1xf32> to vector<32x1xf32>
    %17 = vector.broadcast %16 : vector<32x1xf32> to vector<32x256xf32>
    %18 = arith.addf %14, %17 : vector<32x256xf32>
    %cst_15 = arith.constant 0.000000e+00 : f32
    %19 = vector.broadcast %cst_15 : f32 to vector<32x256xf32>
    %20 = arith.maximumf %18, %19 : vector<32x256xf32>
    %21 = arith.addf %20, %2 : vector<32x256xf32>
    %c0_16 = arith.constant 0 : index
    %c0_17 = arith.constant 0 : index
    %c0_18 = arith.constant 0 : index
    %22 = vector.load %arg5[%c0_16, %c0_17, %c0_18] : memref<1x32x256xf32, #tpu.memory_space<vmem>>, vector<1x32x256xf32>
    %23 = vector.shape_cast %22 : vector<1x32x256xf32> to vector<32x256xf32>
    %24 = vector.shape_cast %21 : vector<32x256xf32> to vector<1x32x256xf32>
    tpu.vector_store %arg5[%c0_16, %c0_17, %c0_18], %24 {strides = array<i32>} : memref<1x32x256xf32, #tpu.memory_space<vmem>>, vector<1x32x256xf32>,
    return
  }
  func.func @transform_0(%arg0: i32, %arg1: i32) -> (i32, i32, i32) {
    %c0_i32 = arith.constant 0 : i32
    %c0_i32_0 = arith.constant 0 : i32
    return %arg0, %arg1, %c0_i32 : i32, i32, i32
  }
  func.func @transform_1(%arg0: i32, %arg1: i32) -> (i32, i32, i32) {
    %c0_i32 = arith.constant 0 : i32
    %c0_i32_0 = arith.constant 0 : i32
    %c0_i32_1 = arith.constant 0 : i32
    %c0_i32_2 = arith.constant 0 : i32
    return %c0_i32, %c0_i32_0, %c0_i32_1 : i32, i32, i32
  }
  func.func @transform_2(%arg0: i32, %arg1: i32) -> (i32, i32, i32) {
    %c0_i32 = arith.constant 0 : i32
    %c0_i32_0 = arith.constant 0 : i32
    %c0_i32_1 = arith.constant 0 : i32
    %c0_i32_2 = arith.constant 0 : i32
    return %c0_i32, %c0_i32_0, %c0_i32_1 : i32, i32, i32
  }
  func.func @transform_3(%arg0: i32, %arg1: i32) -> (i32, i32, i32) {
    %c0_i32 = arith.constant 0 : i32
    %c0_i32_0 = arith.constant 0 : i32
    return %arg0, %c0_i32, %arg1 : i32, i32, i32
  }
}

</mosaic_0001>

<bundles_post_ra>
// kernel: tpu_custom_call.1
= control target key start
LH: loop header
LB: loop body
LE: loop exit
PB: predicated region body
PF: predicated region fallthrough
CT: control target
= control target key end

     0   :  { %8 = vsyncpa [#allocation3], 0  ;;  %s1138_s0 = inlined_call_operand.vmem [shape: f32[2,256,32], index: 0, kind: input, shape index: {}]   ;;  %s1139_s1 = inlined_call_operand.vmem [shape: f32[2,32,32], index: 1, kind: input, shape index: {}]   ;;  %s1140_s2 = inlined_call_operand.vmem [shape: f32[2,32,1], index: 2, kind: input, shape index: {}]   ;;  %s1141_s3 = inlined_call_operand.hbm [shape: f32[2,32,256], index: 3, kind: output, shape index: {}]  }
   0x1   :  { %10 = vsyncpa [#allocation3 + $0x1], 0  ;;  %s879_s12 = smov 0   ;;  %s881_s13 = smov 0  }
   0x2   :  { %s883_s14 = smov 0   ;;  %s885_s15 = smov 0  }
   0x3   :  { %s887_s16 = smov 0   ;;  %s889_s17 = smov 0  }
   0x4 LB: > { %s684_s18 = sadd.s32 4294967295, %s852_s17   ;;  %s685_s19 = sadd.s32 4294967294, %s852_s17   ;;  %s852_s17 = sphi %s889_s17, %s16_s17   ;;  %s848_s16 = sphi %s887_s16, %s1148_s16   ;;  %s844_s15 = sphi %s885_s15, %s1147_s15   ;;  %s840_s14 = sphi %s883_s14, %s1146_s14   ;;  %s836_s13 = sphi %s881_s13, %s1145_s13   ;;  %s832_s12 = sphi %s879_s12, %s1144_s12  }
   0x5   : > { %s28_s20 = sadd.s32 1, %s848_s16  ;;  %s107_s21 = sadd.s32 1, %s840_s14 }
   0x6   : > { %p30_p0 = scmp.ge.s32.totalorder %s28_s20, 2  ;;  %p117_p1 = scmp.ne.s32.totalorder %s840_s14, %s836_s13 }
   0x7   : > { %p118_p2 = scmp.eq.s32.totalorder %s684_s18, 1  ;;  %p123_p3 = scmp.ne.s32.totalorder %s836_s13, %s832_s12 }
   0x8   : > { %s1150_s20 = smov (%p30_p0, %s28_s20), 0  ;;  %p124_p5 = scmp.eq.s32.totalorder %s685_s19, 1 }
   0x9   : > { %p919_p4 = por %p118_p2, %p117_p1  ;;  %s102_s23 = ssub.s32 %s848_s16, %s1150_s20 }
   0xa   : > { %p688_p6 = scmp.ge.s32.totalorder %s852_s17, 1  ;;  %p105_p7 = scmp.eq.s32.totalorder %s102_s23, 0 }
   0xb   : > { %p926_p8 = por %p124_p5, %p123_p3  ;;  %p161_p9 = scmp.lt.s32.totalorder %s852_s17, 3 }
   0xc   : > { %s932_s25 = scalar_select %p105_p7, %s840_s14, %s107_s21  }
   0xd   : > { %p162_p10 = pnand %p688_p6, %p161_p9 }
   0xe   : > { %p190_p11 = scmp.lt.s32.totalorder (!%p162_p10), %s844_s15, 1  ;;  %s186_s29 = sand.u32 (!%p162_p10), 1, %s836_s13  }
   0xf   : > { %165 = sbr.rel (%p162_p10) target bundleno = 616 (0x268), region = 32  ;;  %s714_s5 = sshll.u32 (!%p162_p10), %s844_s15, 10 }
  0x10   : > { %s1084_s9 = scalar_lea.hbm (!%p162_p10), %s1141_s3, %s714_s5  ;;  %s856_s11 = smov (!%p162_p10), [#allocation2]  }
  0x11   : > { %s780_s18 = sshll.u32 (!%p162_p10), %s856_s11, 4  ;;  %s781_s18 = int_to_ptr.vmem [resolvable:$false] %s780_s18 }
  0x12   : > { %s782_s19 = scalar_lea.vmem (!%p162_p10), %s781_s18, 2048 }
  0x14   : > { %s191_s26 = scalar_select %p190_p11, %s844_s15, 1  ;;  %v854_v12 = vmov 0.0   ;;  %v302_v33 = vld [vmem:[%s1140_s2 + $0x10] sm:$0xff]  ;;  %v855_v34 = vmov 0   ;;  %v301_v35 = vld [vmem:[%s1140_s2 + $0x8] sm:$0xff]  ;;  %v300_v36 = vld [vmem:[%s1140_s2] sm:$0xff] }
  0x15   : > { %401 = vmatprep.mubr.f32.mxu0 %v854_v12  ;;  %540 = vmatprep.mubr.f32.mxu1 %v854_v12  ;;  %v303_v37 = vld [vmem:[%s1140_s2 + $0x18] sm:$0xff]  ;;  %v700_v38 = vld [vmem:[%s1140_s2 + $0x20] sm:$0xff]  ;;  %v701_v39 = vld [vmem:[%s1140_s2 + $0x28] sm:$0xff]  ;;  %vm324_vm0 = vcmask 261120   ;;  %s1093_s15 = scalar_lea.sflag [#allocation3], %s186_s29 }
  0x16   : > { %s713_s27 = sshll.u32 %s191_s26, 8  ;;  %v702_v40 = vld [vmem:[%s1140_s2 + $0x30] sm:$0xff]  ;;  %v703_v41 = vld [vmem:[%s1140_s2 + $0x38] sm:$0xff]  ;;  %v296_v50 = vld [vmem:[%s1139_s1] sm:$0xff] }
  0x17   : > { %s939_s30 = scalar_lea.vmem %s1138_s0, %s713_s27  ;;  %v297_v51 = vld [vmem:[%s1139_s1 + $0x8] sm:$0xff]  ;;  %v298_v52 = vld [vmem:[%s1139_s1 + $0x10] sm:$0xff]  ;;  %v299_v53 = vld [vmem:[%s1139_s1 + $0x18] sm:$0xff] }
  0x18   : > { %v216_v0 = vld [vmem:[%s939_s30 + $0x80] sm:$0xff]  ;;  %v217_v2 = vld [vmem:[%s939_s30 + $0x88] sm:$0xff]  ;;  %v218_v4 = vld [vmem:[%s939_s30 + $0x90] sm:$0xff] }
  0x19   : > { %v200_v1 = vld [vmem:[%s939_s30] sm:$0xff]  ;;  %264 = vxpose.xlu0.b32.start [1/16] (narrow) %v216_v0, 32  ;;  %v201_v3 = vld [vmem:[%s939_s30 + $0x8] sm:$0xff]  ;;  %v202_v5 = vld [vmem:[%s939_s30 + $0x10] sm:$0xff] }
  0x1a   : > { %232 = vxpose.xlu1.b32.start [1/16] (narrow) %v200_v1, 32  ;;  %v219_v6 = vld [vmem:[%s939_s30 + $0x98] sm:$0xff]  ;;  %v220_v8 = vld [vmem:[%s939_s30 + $0xa0] sm:$0xff]  ;;  %v221_v10 = vld [vmem:[%s939_s30 + $0xa8] sm:$0xff] }
  0x1b   : > { %v203_v7 = vld [vmem:[%s939_s30 + $0x18] sm:$0xff]  ;;  %v204_v9 = vld [vmem:[%s939_s30 + $0x20] sm:$0xff]  ;;  %v205_v11 = vld [vmem:[%s939_s30 + $0x28] sm:$0xff] }
  0x1c   : > { %v222_v13 = vld [vmem:[%s939_s30 + $0xb0] sm:$0xff]  ;;  %v223_v15 = vld [vmem:[%s939_s30 + $0xb8] sm:$0xff]  ;;  %v224_v17 = vld [vmem:[%s939_s30 + $0xc0] sm:$0xff] }
  0x1d   : > { %265 = vxpose.xlu0.b32.cont [2/16] (narrow) %v217_v2, 32  ;;  %v206_v14 = vld [vmem:[%s939_s30 + $0x30] sm:$0xff]  ;;  %v207_v16 = vld [vmem:[%s939_s30 + $0x38] sm:$0xff]  ;;  %v208_v18 = vld [vmem:[%s939_s30 + $0x40] sm:$0xff] }
  0x1e   : > { %233 = vxpose.xlu1.b32.cont [2/16] (narrow) %v201_v3, 32  ;;  %v225_v19 = vld [vmem:[%s939_s30 + $0xc8] sm:$0xff]  ;;  %v226_v21 = vld [vmem:[%s939_s30 + $0xd0] sm:$0xff]  ;;  %v227_v23 = vld [vmem:[%s939_s30 + $0xd8] sm:$0xff] }
  0x1f   : > { %v209_v20 = vld [vmem:[%s939_s30 + $0x48] sm:$0xff]  ;;  %v210_v22 = vld [vmem:[%s939_s30 + $0x50] sm:$0xff]  ;;  %v211_v24 = vld [vmem:[%s939_s30 + $0x58] sm:$0xff] }
  0x20   : > { %v228_v25 = vld [vmem:[%s939_s30 + $0xe0] sm:$0xff]  ;;  %v229_v27 = vld [vmem:[%s939_s30 + $0xe8] sm:$0xff]  ;;  %v230_v29 = vld [vmem:[%s939_s30 + $0xf0] sm:$0xff] }
  0x21   : > { %266 = vxpose.xlu0.b32.cont [3/16] (narrow) %v218_v4, 32  ;;  %v212_v26 = vld [vmem:[%s939_s30 + $0x60] sm:$0xff]  ;;  %v213_v28 = vld [vmem:[%s939_s30 + $0x68] sm:$0xff]  ;;  %v214_v30 = vld [vmem:[%s939_s30 + $0x70] sm:$0xff] }
  0x22   : > { %234 = vxpose.xlu1.b32.cont [3/16] (narrow) %v202_v5, 32  ;;  %v231_v31 = vld [vmem:[%s939_s30 + $0xf8] sm:$0xff] }
  0x23   : > { %v215_v32 = vld [vmem:[%s939_s30 + $0x78] sm:$0xff]  ;;  %s689_s30 = sshll.u32 %s186_s29, 6 }
  0x24   : > { %s1065_s4 = scalar_lea.vmem [#allocation2], %s689_s30 }
  0x25   : > { %267 = vxpose.xlu0.b32.cont [4/16] (narrow) %v219_v6, 32  ;;  %s605_s6 = sshll.u32 %s1065_s4, 4  ;;  %s1086_s6 = int_to_ptr.vmem [resolvable:$true] %s605_s6 }
  0x26   : > { %235 = vxpose.xlu1.b32.cont [4/16] (narrow) %v203_v7, 32  ;;  %s776_s10 = scalar_lea.vmem %s1086_s6, 1024  ;;  %p783_p1 = scmp.lt.s32.totalorder %s1086_s6, %s781_s18 }
  0x27   : > { %p777_p12 = scmp.ne.s32.totalorder %s1086_s6, %s776_s10  ;;  %p784_p2 = scmp.lt.s32.totalorder %s782_s19, %s776_s10 }
  0x29   : > { %268 = vxpose.xlu0.b32.cont [5/16] (narrow) %v220_v8, 32  ;;  %p778_p13 = pnand %p777_p12, %p919_p4  ;;  %p785_p3 = por %p784_p2, %p783_p1 }
  0x2a   : > { %236 = vxpose.xlu1.b32.cont [5/16] (narrow) %v204_v9, 32 }
  0x2b   : > { %p779_p0 = pneg %p778_p13 }
  0x2d   : > { %269 = vxpose.xlu0.b32.cont [6/16] (narrow) %v221_v10, 32  ;;  %p786_p5 = pnand %p785_p3, %p779_p0 }
  0x2e   : > { %237 = vxpose.xlu1.b32.cont [6/16] (narrow) %v205_v11, 32 }
  0x31   : > { %270 = vxpose.xlu0.b32.cont [7/16] (narrow) %v222_v13, 32 }
  0x32   : > { %238 = vxpose.xlu1.b32.cont [7/16] (narrow) %v206_v14, 32 }
  0x35   : > { %271 = vxpose.xlu0.b32.cont [8/16] (narrow) %v223_v15, 32 }
  0x36   : > { %239 = vxpose.xlu1.b32.cont [8/16] (narrow) %v207_v16, 32 }
  0x39   : > { %272 = vxpose.xlu0.b32.cont [9/16] (narrow) %v224_v17, 32 }
  0x3a   : > { %240 = vxpose.xlu1.b32.cont [9/16] (narrow) %v208_v18, 32 }
  0x3d   : > { %273 = vxpose.xlu0.b32.cont [10/16] (narrow) %v225_v19, 32  ;;  %v696_v19 = vld [vmem:[%s1139_s1 + $0x20] sm:$0xff] }
  0x3e   : > { %241 = vxpose.xlu1.b32.cont [10/16] (narrow) %v209_v20, 32  ;;  %v697_v20 = vld [vmem:[%s1139_s1 + $0x28] sm:$0xff] }
  0x41   : > { %274 = vxpose.xlu0.b32.cont [11/16] (narrow) %v226_v21, 32  ;;  %v698_v21 = vld [vmem:[%s1139_s1 + $0x30] sm:$0xff] }
  0x42   : > { %242 = vxpose.xlu1.b32.cont [11/16] (narrow) %v210_v22, 32  ;;  %v699_v22 = vld [vmem:[%s1139_s1 + $0x38] sm:$0xff] }
  0x45   : > { %275 = vxpose.xlu0.b32.cont [12/16] (narrow) %v227_v23, 32 }
  0x46   : > { %243 = vxpose.xlu1.b32.cont [12/16] (narrow) %v211_v24, 32 }
  0x49   : > { %276 = vxpose.xlu0.b32.cont [13/16] (narrow) %v228_v25, 32 }
  0x4a   : > { %244 = vxpose.xlu1.b32.cont [13/16] (narrow) %v212_v26, 32 }
  0x4d   : > { %277 = vxpose.xlu0.b32.cont [14/16] (narrow) %v229_v27, 32 }
  0x4e   : > { %245 = vxpose.xlu1.b32.cont [14/16] (narrow) %v213_v28, 32 }
  0x51   : > { %278 = vxpose.xlu0.b32.cont [15/16] (narrow) %v230_v29, 32 }
  0x52   : > { %246 = vxpose.xlu1.b32.cont [15/16] (narrow) %v214_v30, 32 }
  0x55   : > { %279 = vxpose.xlu0.b32.end [16/16] (narrow) %v231_v31, 32 }
  0x56   : > { %247 = vxpose.xlu1.b32.end [16/16] (narrow) %v215_v32, 32 }
  0x74   : > { %775 = vset.pattern.permute.xlu1 %v855_v34 }
  0x75   : > { %316 = vperm.xlu1 %775, %v302_v33  }
  0x79   : > { %311 = vperm.xlu1 %775, %v301_v35  }
  0x7d   : > { %306 = vperm.xlu1 %775, %v300_v36  }
  0x7e   : > { %774 = vset.pattern.permute.xlu0 %v855_v34 }
  0x7f   : > { %321 = vperm.xlu0 %774, %v303_v37  }
  0x81   : > { %446 = vperm.xlu1 %775, %v700_v38  }
  0x83   : > { %451 = vperm.xlu0 %774, %v701_v39  }
  0x85   : > { %456 = vperm.xlu1 %775, %v702_v40  }
  0x87   : > { %461 = vperm.xlu0 %774, %v703_v41  }
  0x95   : > { %v999_v42 = vpop.trf.xlu0 }
  0x96   : > { %v1001_v43 = vpop.trf.xlu1 }
  0x99   : > { %v1003_v44 = vpop.trf.xlu0 }
  0x9a   : > { %v1005_v45 = vpop.trf.xlu1 }
  0x9d   : > { %v1007_v46 = vpop.trf.xlu0 }
  0x9e   : > { %v1009_v47 = vpop.trf.xlu1 }
  0xa1   : > { %v1011_v48 = vpop.trf.xlu0 }
  0xa2   : > { %v1013_v49 = vpop.trf.xlu1  ;;  %361 = vmatprep.subr.mxu0 %v1011_v48 }
  0xa3   : > { %362 = vmatpush1.msra.mxu0 %v1013_v49 }
  0xa4   : > { %363 = vmatprep.subr.mxu0 %v1007_v46 }
  0xa5   : > { %364 = vmatpush1.msra.mxu0 %v1009_v47 }
  0xa6   : > { %365 = vmatprep.subr.mxu0 %v1003_v44 }
  0xa7   : > { %366 = vmatpush1.msra.mxu0 %v1005_v45 }
  0xa8   : > { %367 = vmatprep.subr.mxu0 %v999_v42 }
  0xa9   : > { %368 = vmatpush1.msra.mxu0 %v1001_v43 }
  0xaa   : > { %692 = vmatmul.mubr.msk.f32.vlgmr.msra.gmra.mxu0 %vm324_vm0, %v296_v50 }
  0xab   : > { %407 = vmatprep.mubr.f32.mxu0 %v854_v12 }
  0xae   : > { %693 = vmatmul.mubr.msk.f32.gmra.mxu0 %vm324_vm0, %v297_v51 }
  0xaf   : > { %413 = vmatprep.mubr.f32.mxu0 %v854_v12 }
  0xb2   : > { %694 = vmatmul.mubr.msk.f32.gmra.mxu0 %vm324_vm0, %v298_v52 }
  0xb3   : > { %419 = vmatprep.mubr.f32.mxu0 %v854_v12 }
  0xb6   : > { %695 = vmatmul.mubr.msk.f32.gmra.mxu0 %vm324_vm0, %v299_v53 }
  0xf0   : > { %v317_v57 = vpop.permute.xlu1 %316 }
  0xf4   : > { %v312_v61 = vpop.permute.xlu1 %311 }
  0xf8   : > { %v307_v5 = vpop.permute.xlu1 %306 }
  0xfa   : > { %v322_v63 = vpop.permute.xlu0 %321 }
  0xfc   : > { %v447_v23 = vpop.permute.xlu1 %446 }
  0xfe   : > { %v452_v29 = vpop.permute.xlu0 %451 }
 0x100   : > { %v457_v37 = vpop.permute.xlu1 %456 }
 0x102   : > { %v462_v52 = vpop.permute.xlu0 %461 }
 0x16a   : > { %v403_v54 = vpop.f32.mrf.mxu0 }
 0x16b   : > { %v404_v13 = vadd.f32 %v403_v54, %v307_v5 }
 0x16c   : > { %v405_v55 = vpop.f32.mrf.mxu0 }
 0x16d   : > { %v406_v10 = vadd.f32 %v405_v55, %v307_v5  ;;  %v426_v18 = vmax.f32 %v404_v13, 0.0 }
 0x16e   : > { %v409_v56 = vpop.f32.mrf.mxu0 }
 0x16f   : > { %v410_v8 = vadd.f32 %v409_v56, %v312_v61  ;;  %v427_v17 = vmax.f32 %v406_v10, 0.0 }
 0x170   : > { %v411_v58 = vpop.f32.mrf.mxu0 }
 0x171   : > { %v412_v6 = vadd.f32 %v411_v58, %v312_v61  ;;  %v428_v16 = vmax.f32 %v410_v8, 0.0 }
 0x172   : > { %v415_v59 = vpop.f32.mrf.mxu0 }
 0x173   : > { %v416_v4 = vadd.f32 %v415_v59, %v317_v57  ;;  %v429_v15 = vmax.f32 %v412_v6, 0.0 }
 0x174   : > { %v417_v60 = vpop.f32.mrf.mxu0 }
 0x175   : > { %v418_v2 = vadd.f32 %v417_v60, %v317_v57  ;;  %v430_v14 = vmax.f32 %v416_v4, 0.0 }
 0x176   : > { %v421_v62 = vpop.f32.mrf.mxu0 }
 0x177   : > { %v422_v0 = vadd.f32 %v421_v62, %v322_v63  ;;  %v431_v11 = vmax.f32 %v418_v2, 0.0 }
 0x178   : > { %v423_v1 = vpop.f32.mrf.mxu0 }
 0x179   : > { %v424_v3 = vadd.f32 %v423_v1, %v322_v63  ;;  %v432_v9 = vmax.f32 %v422_v0, 0.0 }
 0x17b   : > { %v433_v7 = vmax.f32 %v424_v3, 0.0 }
 0x17d   : > { %500 = vmatprep.subr.mxu1 %v433_v7 }
 0x17e   : > { %501 = vmatpush1.msra.mxu1 %v432_v9 }
 0x17f   : > { %502 = vmatprep.subr.mxu1 %v431_v11 }
 0x180   : > { %503 = vmatpush1.msra.mxu1 %v430_v14 }
 0x181   : > { %504 = vmatprep.subr.mxu1 %v429_v15 }
 0x182   : > { %505 = vmatpush1.msra.mxu1 %v428_v16 }
 0x183   : > { %506 = vmatprep.subr.mxu1 %v427_v17 }
 0x184   : > { %507 = vmatpush1.msra.mxu1 %v426_v18 }
 0x185   : > { %704 = vmatmul.mubr.msk.f32.vlgmr.msra.gmra.mxu1 %vm324_vm0, %v696_v19 }
 0x186   : > { %546 = vmatprep.mubr.f32.mxu1 %v854_v12 }
 0x189   : > { %705 = vmatmul.mubr.msk.f32.gmra.mxu1 %vm324_vm0, %v697_v20 }
 0x18a   : > { %552 = vmatprep.mubr.f32.mxu1 %v854_v12 }
 0x18d   : > { %706 = vmatmul.mubr.msk.f32.gmra.mxu1 %vm324_vm0, %v698_v21 }
 0x18e   : > { %558 = vmatprep.mubr.f32.mxu1 %v854_v12 }
 0x191   : > { %707 = vmatmul.mubr.msk.f32.gmra.mxu1 %vm324_vm0, %v699_v22 }
 0x245   : > { %v542_v24 = vpop.f32.mrf.mxu1 }
 0x246   : > { %v543_v25 = vadd.f32 %v542_v24, %v447_v23 }
 0x247   : > { %v544_v26 = vpop.f32.mrf.mxu1 }
 0x248   : > { %v565_v27 = vmax.f32 %v543_v25, 0.0  ;;  %v545_v28 = vadd.f32 %v544_v26, %v447_v23 }
 0x249   : > { %v548_v30 = vpop.f32.mrf.mxu1 }
 0x24a   : > { %v573_v31 = vadd.f32 %v565_v27, %v1001_v43  ;;  %v566_v12 = vmax.f32 %v545_v28, 0.0  ;;  %v549_v32 = vadd.f32 %v548_v30, %v452_v29 }
 0x24b   : > { %v550_v33 = vpop.f32.mrf.mxu1 }
 0x24c   : > { %581 = vst [vmem:[%s1065_s4] sm:$0xff] %v573_v31  ;;  %v574_v34 = vadd.f32 %v566_v12, %v999_v42  ;;  %v567_v35 = vmax.f32 %v549_v32, 0.0  ;;  %v551_v36 = vadd.f32 %v550_v33, %v452_v29 }
 0x24d   : > { %v554_v38 = vpop.f32.mrf.mxu1 }
 0x24e   : > { %582 = vst [vmem:[%s1065_s4 + $0x8] sm:$0xff] %v574_v34  ;;  %v575_v39 = vadd.f32 %v567_v35, %v1005_v45  ;;  %v568_v40 = vmax.f32 %v551_v36, 0.0  ;;  %v555_v41 = vadd.f32 %v554_v38, %v457_v37 }
 0x24f   : > { %v556_v43 = vpop.f32.mrf.mxu1 }
 0x250   : > { %583 = vst [vmem:[%s1065_s4 + $0x10] sm:$0xff] %v575_v39  ;;  %v576_v50 = vadd.f32 %v568_v40, %v1003_v44  ;;  %v569_v51 = vmax.f32 %v555_v41, 0.0  ;;  %v557_v42 = vadd.f32 %v556_v43, %v457_v37 }
 0x251   : > { %v560_v53 = vpop.f32.mrf.mxu1 }
 0x252   : > { %584 = vst [vmem:[%s1065_s4 + $0x18] sm:$0xff] %v576_v50  ;;  %v577_v54 = vadd.f32 %v569_v51, %v1009_v47  ;;  %v570_v55 = vmax.f32 %v557_v42, 0.0  ;;  %v561_v45 = vadd.f32 %v560_v53, %v462_v52 }
 0x253   : > { %v562_v56 = vpop.f32.mrf.mxu1 }
 0x254   : > { %585 = vst [vmem:[%s1065_s4 + $0x20] sm:$0xff] %v577_v54  ;;  %v578_v57 = vadd.f32 %v570_v55, %v1007_v46  ;;  %v571_v58 = vmax.f32 %v561_v45, 0.0  ;;  %v563_v44 = vadd.f32 %v562_v56, %v462_v52 }
 0x256   : > { %586 = vst [vmem:[%s1065_s4 + $0x28] sm:$0xff] %v578_v57  ;;  %v579_v59 = vadd.f32 %v571_v58, %v1013_v49  ;;  %v572_v60 = vmax.f32 %v563_v44, 0.0 }
 0x258   : > { %587 = vst [vmem:[%s1065_s4 + $0x30] sm:$0xff] %v579_v59  ;;  %v580_v46 = vadd.f32 %v572_v60, %v1011_v48 }
 0x25a   : > { %588 = vst [vmem:[%s1065_s4 + $0x38] sm:$0xff] %v580_v46 }
 0x25b   : > { %789 = shalt.err (!%p786_p5)
}
 0x25c   : > { %s790_s21 = scalar_lea.hbm %s1084_s9, 1024  ;;  %s794_s27 = scalar_lea.hbm %s1141_s3, 2048 }
 0x25d   : > { %p791_p6 = scmp.ne.s32.totalorder %s1084_s9, %s790_s21  ;;  %p795_p10 = scmp.lt.s32.totalorder %s1084_s9, %s1141_s3 }
 0x25e   : > { %p796_p11 = scmp.lt.s32.totalorder %s794_s27, %s790_s21 }
 0x25f   : > { %p792_p7 = pnand %p791_p6, %p919_p4 }
 0x260   : > { %p797_p12 = por %p796_p11, %p795_p10 }
 0x261   : > { %p793_p9 = pneg %p792_p7 }
 0x263   : > { %p798_p13 = pnand %p797_p12, %p793_p9 }
 0x265   : > { %801 = shalt.err (!%p798_p13)
}
 0x266   : > { %s857_s30 = smov 256   ;;  %s858_s4 = smov 16  }
 0x267   : > { %715 = dma.vmem_to_hbm [thread:$0]  (%p919_p4), %s1086_s6, 1024, %s1084_s9, %s1093_s15, %s857_s30, %s857_s30, %s858_s4  }
 0x268 PF: > { %p721_p0 = scmp.ge.s32.totalorder %s852_s17, 2  ;;  %s620_s5 = sand.u32 1, %s832_s12  }
 0x269   : > { %s621_s7 = scalar_lea.sflag [#allocation3], %s620_s5 }
 0x26a   : > { %p718_p1 = pnand %p721_p0, %p926_p8 }
 0x26c   : > { %p719_p2 = pneg %p718_p1 }
 0x26e   : > { %827 = dma.done.wait (%p719_p2), %s621_s7, 1024  }
 0x26f   : > { %829 = vsyncadd (%p719_p2), %s621_s7, 4294966272  ;;  %s16_s17 = sadd.s32 1, %s852_s17   ;;  %s1144_s12 = smov %s836_s13 }
 0x270   : > { %p13_p3 = scmp.ge.s32.totalorder %s16_s17, 4   ;;  %s1145_s13 = smov %s840_s14 }
 0x271   : > { %s1146_s14 = smov %s932_s25  ;;  %s1147_s15 = smov %s848_s16 }
 0x272   : > { %s1148_s16 = smov %s1150_s20  ;;  %15 = sbr.rel (!%p13_p3) target bundleno = 4 (0x4), region = 69 }
 0x277   :  { %626 = vsyncpa [#allocation3], 1 }
 0x278   :  { %628 = vsyncpa [#allocation3 + $0x1], 1 }

</bundles_post_ra>
